<compile_context>
chip_gen: v7x
topology: tpu7x:2x2x1
jax: 0.10.0
libtpu: 0.0.40
codegen_flags: <defaults>
</compile_context>

<pallas_src>
import math

import jax
import jax.numpy as jnp
from jax.experimental import pallas as pl
from jax.experimental.pallas import tpu as pltpu


_TARGET_BLOCK_BYTES = 4 * 1024 * 1024   # ~4 MiB block; 2-in + 2-out double buffered
_VMEM_LIMIT_BYTES = 32 * 1024 * 1024    # explicit scoped-VMEM budget (safe on v5e/v6e/v7x)
_MIN_GRID_STEPS = 4                     # enough steps to shard across v7x's 2 TCs


def _cdiv(a: int, b: int) -> int:
    return -(-a // b)


def _lcm(a: int, b: int) -> int:
    return a * b // math.gcd(a, b)


def _sublane(itemsize: int) -> int:
    # f32 -> 8, bf16 -> 16, int8/fp8 -> 32 (sub-32-bit dtypes pack along sublanes).
    return 8 * max(1, 4 // itemsize)


def _pick_lane_tile(L: int, itemsize: int) -> int:
    """Lane (last-dim) tile.

    Full width when it fits the block budget; otherwise a multiple of 128
    (preferring divisors of L) so the block never exceeds ~_TARGET_BLOCK_BYTES
    even at the minimum row count.  Ragged last blocks are handled by Pallas.
    """
    sub = _sublane(itemsize)
    cap = max(128, _TARGET_BLOCK_BYTES // (sub * itemsize))  # elems per row at min rows
    if L <= cap:
        return L
    if L % 128 != 0:
        # Large, unaligned last dim: cap anyway (ragged final lane block).
        return (cap // 128) * 128
    best, d = 128, 128
    while d <= cap:
        if L % d == 0:
            best = d
        d += 128
    return best


def _pick_row_tile(R: int, tl: int, itemsize: int) -> int:
    """Row (second-minor) tile: multiple of the sublane packing, ~block-budget sized."""
    sub = _sublane(itemsize)
    row_bytes = tl * itemsize
    if R * row_bytes <= _TARGET_BLOCK_BYTES:
        return R
    tr = max(sub, (_TARGET_BLOCK_BYTES // row_bytes) // sub * sub)
    return min(tr, R)


def _dyt_kernel(alpha_ref, x_ref, gamma_ref, o_ref):
    # alpha_ref : (1,) f32 scalar in SMEM
    # x_ref/o_ref: (TR, TL) tile in VMEM
    # gamma_ref : (1, TL) per-lane gamma  or  (TR, 1) per-row gamma, in VMEM
    # Compute in f32: free (HBM-bound kernel) and matches f32 parameter precision.
    x = x_ref[...].astype(jnp.float32)
    g = gamma_ref[...].astype(jnp.float32)
    y = jnp.tanh(x * alpha_ref[0]) * g
    o_ref[...] = y.astype(o_ref.dtype)


def _dyt_2d(x2, alpha, g2, gamma_per_lane):
    """x2: (R, L). g2: (1, L) f32 if gamma_per_lane else (R, 1) f32."""
    R, L = x2.shape
    itemsize = jnp.dtype(x2.dtype).itemsize
    sub = _sublane(itemsize)

    tl = _pick_lane_tile(L, itemsize)
    tr = _pick_row_tile(R, tl, itemsize)

    # Make sure there are enough grid steps for megacore (v7x: 2 TensorCores).
    while True:
        steps = _cdiv(R, tr) * _cdiv(L, tl)
        if steps >= _MIN_GRID_STEPS or tr <= sub:
            break
        new_tr = max(sub, ((tr // 2 + sub - 1) // sub) * sub)
        if new_tr >= tr:
            break
        tr = new_tr

    grid = (_cdiv(R, tr), _cdiv(L, tl))

    if gamma_per_lane:
        g_spec = pl.BlockSpec((1, tl), lambda i, j: (0, j))
    else:
        g_spec = pl.BlockSpec((tr, 1), lambda i, j: (i, 0))

    alpha_arr = jnp.asarray(alpha, dtype=jnp.float32).reshape(1)

    return pl.pallas_call(
        _dyt_kernel,
        out_shape=jax.ShapeDtypeStruct((R, L), x2.dtype),
        grid=grid,
        in_specs=[
            pl.BlockSpec(memory_space=pltpu.SMEM),        # alpha (scalar)
            pl.BlockSpec((tr, tl), lambda i, j: (i, j)),  # x tile
            g_spec,                                       # gamma tile
        ],
        out_specs=pl.BlockSpec((tr, tl), lambda i, j: (i, j)),
        compiler_params=pltpu.CompilerParams(
            dimension_semantics=("parallel", "parallel"),
            vmem_limit_bytes=_VMEM_LIMIT_BYTES),
    )(alpha_arr, x2, g2)


def dyt(x, alpha, gamma):
    """gamma * tanh(alpha * x) with PyTorch DyT broadcasting rules."""
    g32 = gamma.astype(jnp.float32)

    if x.ndim == 3:
        B, N, C = x.shape
        if gamma.shape != (C,):
            raise ValueError(f"gamma shape {gamma.shape} != ({C},)")
        total = B * N * C
        if C % 128 == 0:
            # channels already lane-dense: rows = B*N tokens, lanes = C
            out = _dyt_2d(x.reshape(B * N, C), alpha, g32.reshape(1, C),
                          gamma_per_lane=True)
        else:
            L = _lcm(C, 128)
            if total % L == 0:
                # Fold sequence/batch into the lane axis: lanes = lcm(C,128)
                # (lane-dense output, gamma per-lane) while keeping as many
                # rows as possible for full sublane utilization.
                g_row = jnp.tile(g32, L // C).reshape(1, L)
                out = _dyt_2d(x.reshape(total // L, L), alpha, g_row,
                              gamma_per_lane=True)
            else:
                # Fallback: channels on lanes (may emit masked stores).
                out = _dyt_2d(x.reshape(B * N, C), alpha, g32.reshape(1, C),
                              gamma_per_lane=True)
        return out.reshape(B, N, C)

    elif x.ndim == 4:
        B, C, H, W = x.shape
        if gamma.shape != (C,):
            raise ValueError(f"gamma shape {gamma.shape} != ({C},)")
        hw = H * W
        total = B * C * hw
        if hw % 128 == 0:
            # Large, 128-aligned feature maps: rows = B*C planes (per-row
            # gamma), lanes = H*W pixels.  Already lane-dense.
            g_rows = jnp.broadcast_to(g32[None, :], (B, C)).reshape(B * C, 1)
            out = _dyt_2d(x.reshape(B * C, hw), alpha, g_rows,
                          gamma_per_lane=False)
        else:
            period = C * hw                       # gamma pattern period in the flat view
            L = _lcm(period, 128)
            if total % L == 0:
                # Small / unaligned H*W (7x7, 14x14, ...): fold channels into
                # the lane axis so stores are full-width; gamma becomes a
                # per-lane row built with repeat/tile.
                g_row = jnp.tile(jnp.repeat(g32, hw), L // period).reshape(1, L)
                out = _dyt_2d(x.reshape(total // L, L), alpha, g_row,
                              gamma_per_lane=True)
            else:
                # Fallback: per-row gamma on unaligned lanes (masked stores).
                g_rows = jnp.broadcast_to(g32[None, :], (B, C)).reshape(B * C, 1)
                out = _dyt_2d(x.reshape(B * C, hw), alpha, g_rows,
                              gamma_per_lane=False)
        return out.reshape(B, C, H, W)

    else:
        raise NotImplementedError(f"unsupported input rank: {x.ndim}")


class DyT:
    """JAX/Pallas equivalent of the PyTorch DyT module."""

    def __init__(self, dim, init_alpha=0.5, init_gamma=1.0):
        if dim is None:
            raise ValueError("dim (number of channels) must be specified")
        self.alpha = jnp.asarray(init_alpha, dtype=jnp.float32)
        self.gamma = jnp.full((dim,), init_gamma, dtype=jnp.float32)

    def __call__(self, x):
        return dyt(x, self.alpha, self.gamma)


if __name__ == "__main__":
    key = jax.random.PRNGKey(0)
    k3, k4, k5, kg3, kg4, kg5 = jax.random.split(key, 6)

    # ---- 3D transformer layout: (B, Seq, C) -- folded lane-dense path ----
    B, S, C = 2, 8, 32
    x3 = jax.random.normal(k3, (B, S, C), dtype=jnp.float32)
    m3 = DyT(C)
    m3.alpha = jnp.float32(0.7)
    m3.gamma = 1.0 + 0.1 * jax.random.normal(kg3, (C,), dtype=jnp.float32)

    out3 = jax.block_until_ready(m3(x3))
    ref3 = m3.gamma[None, None, :] * jnp.tanh(m3.alpha * x3)
    assert out3.shape == x3.shape and out3.dtype == x3.dtype
    assert jnp.allclose(out3, ref3, atol=1e-5, rtol=1e-5)

    # ---- 4D conv layout: (B, C, H, W), 128-aligned H*W -- per-row path ----
    B4, C4, H, W = 2, 4, 16, 16
    x4 = jax.random.normal(k4, (B4, C4, H, W), dtype=jnp.float32)
    m4 = DyT(C4)
    m4.alpha = jnp.float32(0.5)
    m4.gamma = 1.0 + 0.1 * jax.random.normal(kg4, (C4,), dtype=jnp.float32)

    out4 = jax.block_until_ready(m4(x4))
    ref4 = m4.gamma[None, :, None, None] * jnp.tanh(m4.alpha * x4)
    assert out4.shape == x4.shape and out4.dtype == x4.dtype
    assert jnp.allclose(out4, ref4, atol=1e-5, rtol=1e-5)

    # ---- 4D conv layout with unaligned H*W -- channel-folded lane-dense path ----
    B5, C5, H5, W5 = 2, 4, 4, 4
    x5 = jax.random.normal(k5, (B5, C5, H5, W5), dtype=jnp.float32)
    m5 = DyT(C5)
    m5.alpha = jnp.float32(0.9)
    m5.gamma = 1.0 + 0.1 * jax.random.normal(kg5, (C5,), dtype=jnp.float32)

    out5 = jax.block_until_ready(m5(x5))
    ref5 = m5.gamma[None, :, None, None] * jnp.tanh(m5.alpha * x5)
    assert out5.shape == x5.shape and out5.dtype == x5.dtype
    assert jnp.allclose(out5, ref5, atol=1e-5, rtol=1e-5)

    print("KERNEL_OK")
</pallas_src>

<mosaic_0001>
module attributes {stable_mosaic.version = 11 : i64} {
  func.func @_dyt_kernel(%arg0: i32, %arg1: i32, %arg2: memref<1xf32, #tpu.memory_space<smem>>, %arg3: memref<4x128xf32, #tpu.memory_space<vmem>>, %arg4: memref<1x128xf32, #tpu.memory_space<vmem>>, %arg5: memref<4x128xf32, #tpu.memory_space<vmem>>) attributes {dimension_semantics = [#tpu.dimension_semantics<parallel>, #tpu.dimension_semantics<parallel>], iteration_bounds = array<i64: 1, 1>, scalar_prefetch = 0 : i64, scratch_operands = 0 : i64, tpu.core_type = #tpu.core_type<tc>, window_params = [{transform_indices = @transform_0, window_bounds = array<i64: 1>}, {transform_indices = @transform_1, window_bounds = array<i64: 4, 128>}, {transform_indices = @transform_2, window_bounds = array<i64: 1, 128>}, {transform_indices = @transform_3, window_bounds = array<i64: 4, 128>}]} {
    %c0 = arith.constant 0 : index
    %c0_0 = arith.constant 0 : index
    %0 = vector.load %arg3[%c0, %c0_0] : memref<4x128xf32, #tpu.memory_space<vmem>>, vector<4x128xf32>
    %c0_1 = arith.constant 0 : index
    %c0_2 = arith.constant 0 : index
    %1 = vector.load %arg4[%c0_1, %c0_2] : memref<1x128xf32, #tpu.memory_space<vmem>>, vector<1x128xf32>
    %c0_3 = arith.constant 0 : index
    %2 = memref.load %arg2[%c0_3] : memref<1xf32, #tpu.memory_space<smem>>
    %3 = vector.broadcast %2 : f32 to vector<4x128xf32>
    %4 = arith.mulf %0, %3 : vector<4x128xf32>
    %5 = math.tanh %4 : vector<4x128xf32>
    %6 = vector.broadcast %1 : vector<1x128xf32> to vector<4x128xf32>
    %7 = arith.mulf %5, %6 : vector<4x128xf32>
    %c0_4 = arith.constant 0 : index
    %c0_5 = arith.constant 0 : index
    %8 = vector.load %arg5[%c0_4, %c0_5] : memref<4x128xf32, #tpu.memory_space<vmem>>, vector<4x128xf32>
    tpu.vector_store %arg5[%c0_4, %c0_5], %7 {strides = array<i32>} : memref<4x128xf32, #tpu.memory_space<vmem>>, vector<4x128xf32>,
    return
  }
  func.func @transform_0(%arg0: i32, %arg1: i32) -> i32 {
    %c0_i32 = arith.constant 0 : i32
    %c0_i32_0 = arith.constant 0 : i32
    return %c0_i32 : i32
  }
  func.func @transform_1(%arg0: i32, %arg1: i32) -> (i32, i32) {
    %c0_i32 = arith.constant 0 : i32
    return %arg0, %arg1 : i32, i32
  }
  func.func @transform_2(%arg0: i32, %arg1: i32) -> (i32, i32) {
    %c0_i32 = arith.constant 0 : i32
    %c0_i32_0 = arith.constant 0 : i32
    return %c0_i32, %arg1 : i32, i32
  }
  func.func @transform_3(%arg0: i32, %arg1: i32) -> (i32, i32) {
    %c0_i32 = arith.constant 0 : i32
    return %arg0, %arg1 : i32, i32
  }
}

</mosaic_0001>

<bundles_post_ra>
// kernel: tpu_custom_call.1
= control target key start
LH: loop header
LB: loop body
LE: loop exit
PB: predicated region body
PF: predicated region fallthrough
CT: control target
= control target key end

     0   :  { %9 = vsyncpa [#allocation4], 0  ;;  %s162_s0 = inlined_call_operand.<no memory space> [shape: f32[1], index: 0, kind: input, shape index: {}]   ;;  %s163_s1 = inlined_call_operand.hbm [shape: f32[4,128], index: 1, kind: input, shape index: {}]   ;;  %s164_s2 = inlined_call_operand.vmem [shape: f32[1,128], index: 2, kind: input, shape index: {}]   ;;  %s165_s3 = inlined_call_operand.hbm [shape: f32[4,128], index: 3, kind: output, shape index: {}]  }
   0x1   :  { %10 = vsyncpa [#allocation5], 0  ;;  %s110_s12 = smov [#allocation3]   ;;  %s62_s16 = scalar_lea.hbm %s163_s1, 64 }
   0x2   :  { %s19_s13 = sshll.u32 %s110_s12, 4  ;;  %p63_p0 = scmp.ne.s32.totalorder %s163_s1, %s62_s16  ;;  %s20_s13 = int_to_ptr.vmem [resolvable:$true] %s19_s13 }
   0x3   :  { %p66_p1 = scmp.lt.u32.totalorder %s62_s16, %s163_s1 }
   0x5   :  { %p68_p2 = pnand %p66_p1, %p63_p0 }
   0x7   :  { %71 = shalt.err (!%p68_p2)
}
   0x8   :  { %s72_s21 = scalar_lea.vmem %s20_s13, 64  ;;  %p77_p4 = scmp.lt.s32.totalorder %s20_s13, %s20_s13 }
   0x9   :  { %p73_p3 = scmp.ne.s32.totalorder %s20_s13, %s72_s21  ;;  %p78_p5 = scmp.lt.s32.totalorder %s72_s21, %s72_s21 }
   0xb   :  { %p79_p6 = por %p78_p5, %p77_p4 }
   0xd   :  { %p80_p7 = pnand %p79_p6, %p73_p3 }
   0xf   :  { %83 = shalt.err (!%p80_p7)
}
  0x10   :  { %22 = dma.hbm_to_vmem [thread:$0]  %s163_s1, 64, %s20_s13, [#allocation4]  }
  0x11   :  { %106 = dma.done.wait [#allocation4], 64  }
  0x12   :  { %107 = vsyncadd [#allocation4], 4294967232  ;;  %v31_v0 = vstv %s162_s0  ;;  %v28_v1 = vld [vmem:[#allocation3] sm:$0xf]  ;;  %s111_s28 = smov [#allocation6]  }
  0x13   :  { %v32_v2 = vmul.f32 %v31_v0, %v28_v1  ;;  %v57_v3 = vld [vmem:[%s164_s2] ss:$0 sm:$0xff]  ;;  %s48_s29 = sshll.u32 %s111_s28, 4  ;;  %s49_s29 = int_to_ptr.vmem [resolvable:$true] %s48_s29 }
  0x14   :  { %s84_s1 = scalar_lea.vmem %s49_s29, 64  ;;  %p89_p9 = scmp.lt.s32.totalorder %s49_s29, %s49_s29 }
  0x15   :  { %60 = vtanh.f32 %v32_v2  ;;  %p85_p8 = scmp.ne.s32.totalorder %s49_s29, %s84_s1  ;;  %p90_p10 = scmp.lt.s32.totalorder %s84_s1, %s84_s1 }
  0x17   :  { %p91_p11 = por %p90_p10, %p89_p9 }
  0x19   :  { %p92_p12 = pnand %p91_p11, %p85_p8 }
  0x1f   :  { %v61_v4 = vpop.eup %60 }
  0x20   :  { %v40_v5 = vmul.f32 %v61_v4, %v57_v3 }
  0x22   :  { %41 = vst [vmem:[#allocation6] sm:$0xf] %v40_v5 }
  0x23   :  { %95 = shalt.err (!%p92_p12)
}
  0x24   :  { %s96_s4 = scalar_lea.hbm %s165_s3, 64 }
  0x25   :  { %p97_p13 = scmp.ne.s32.totalorder %s165_s3, %s96_s4  ;;  %p100_p0 = scmp.lt.u32.totalorder %s96_s4, %s165_s3 }
  0x27   :  { %p102_p1 = pnand %p100_p0, %p97_p13 }
  0x29   :  { %105 = shalt.err (!%p102_p1)
}
  0x2a   :  { %51 = dma.vmem_to_hbm [thread:$0]  %s49_s29, 64, %s165_s3, [#allocation5]  }
  0x2b   :  { %108 = dma.done.wait [#allocation5], 64  }
  0x2c   :  { %109 = vsyncadd [#allocation5], 4294967232 }
  0x2d   :  { %55 = vsyncpa [#allocation4], 1 }
  0x2e   :  { %56 = vsyncpa [#allocation5], 1 }

</bundles_post_ra>
